<compile_context>
chip_gen: v5e
topology: v5e:2x2
jax: 0.10.0
libtpu: 0.0.40
codegen_flags: <defaults>
</compile_context>

<pallas_src>
import numpy as np
import jax
import jax.numpy as jnp
from jax.experimental import pallas as pl
from jax.experimental.pallas import tpu as pltpu


# ---------------------------------------------------------------------------
# Kernels
# ---------------------------------------------------------------------------
def _aggregate_kernel_single(w_ref, f_ref, inv_ref, o_ref):
    # Whole contraction dim in one block: no reduction axis, no bookkeeping.
    # w_ref: [tm, k_pad] bf16, f_ref: [k_pad, d_pad] bf16, inv_ref: [tm, 1] f32
    o_ref[...] = (
        jnp.dot(w_ref[...], f_ref[...], preferred_element_type=jnp.float32)
        * inv_ref[...]
    ).astype(o_ref.dtype)


def _aggregate_kernel_reduce(w_ref, f_ref, inv_ref, o_ref):
    # K-reduction variant: accumulate directly into the resident f32 output
    # block (no scratch accumulator, no final copy).
    k = pl.program_id(1)

    @pl.when(k == 0)
    def _():
        o_ref[...] = jnp.zeros_like(o_ref)

    o_ref[...] += jnp.dot(
        w_ref[...], f_ref[...], preferred_element_type=jnp.float32
    )

    @pl.when(k == pl.num_programs(1) - 1)
    def _():
        o_ref[...] = o_ref[...] * inv_ref[...]


# ---------------------------------------------------------------------------
# Tiling / padding helpers
# ---------------------------------------------------------------------------
def _round_up(x, m):
    return ((x + m - 1) // m) * m


def _choose_tiles(n, n_prev, d, vmem_budget=40 * 1024 * 1024):
    """Pick (tm, tn, tk) and padded dims.  tn always covers all of D so W is
    streamed from HBM exactly once."""
    d_pad = _round_up(d, 128)
    tn = d_pad

    # K tile: use a single block (no reduction axis) whenever the
    # double-buffered bf16 feature tile fits half the VMEM budget.
    feat_budget = vmem_budget // 2
    k_full = _round_up(n_prev, 128)
    if 2 * k_full * d_pad * 2 <= feat_budget:
        tk = k_full
    else:
        tk = 512
        while tk > 128 and 2 * tk * d_pad * 2 > feat_budget:
            tk //= 2
    k_pad = _round_up(n_prev, tk)

    # M tile: as large as VMEM allows (512 default = 256-multiple for the
    # v6e/v7x MXU), capped by the (8-aligned) row count.
    tm = 512
    while tm > 8:
        vmem = 2 * (tm * tk * 2 + tk * tn * 2 + tm * tn * 4 + tm * 4)
        if vmem <= vmem_budget:
            break
        tm //= 2
    tm = min(tm, max(8, _round_up(n, 8)))
    n_pad = _round_up(n, tm)
    return tm, tn, tk, n_pad, k_pad, d_pad


# ---------------------------------------------------------------------------
# Pallas wrapper: out = (W @ features) * inv
# ---------------------------------------------------------------------------
def aggregate_pallas(counts, features, inv):
    """counts: [n, n_prev] integer counts (np or jnp); features: [n_prev, D]
    (jnp); inv: [n] per-row 1/len (np or jnp).  Returns f32 [n, D]."""
    n, n_prev = counts.shape
    n_prev2, d = features.shape
    assert n_prev == n_prev2

    tm, tn, tk, n_pad, k_pad, d_pad = _choose_tiles(n, n_prev, d)

    # --- W: host-side pad + bf16 cast when it is a NumPy array (halves H2D
    # bytes and avoids a full device read+write pad pass over W). ---
    if isinstance(counts, np.ndarray):
        w_host = np.zeros((n_pad, k_pad), dtype=jnp.bfloat16)
        w_host[:n, :n_prev] = counts.astype(jnp.bfloat16)
        w = jnp.asarray(w_host)
    else:
        w = (jnp.zeros((n_pad, k_pad), jnp.bfloat16)
             .at[:n, :n_prev].set(counts.astype(jnp.bfloat16)))

    # --- features: pad D to a lane-dense multiple of 128, cast bf16. ---
    f = (jnp.zeros((k_pad, d_pad), jnp.bfloat16)
         .at[:n_prev, :d].set(features.astype(jnp.bfloat16)))

    # --- per-row reciprocal (exact f32 epilogue; 0 for isolated nodes). ---
    if isinstance(inv, np.ndarray):
        iv_host = np.zeros((n_pad, 1), dtype=np.float32)
        iv_host[:n, 0] = inv.astype(np.float32)
        iv = jnp.asarray(iv_host)
    else:
        iv = (jnp.zeros((n_pad, 1), jnp.float32)
              .at[:n, 0].set(inv.astype(jnp.float32)))

    m_blocks = n_pad // tm
    k_blocks = k_pad // tk

    # Accurate HBM-traffic estimate: W once, features re-streamed once per
    # m-block when there is a K reduction, inv + output once.
    feat_restream = m_blocks if k_blocks > 1 else 1
    cost = pl.CostEstimate(
        flops=int(2 * n_pad * k_pad * d_pad),
        transcendentals=0,
        bytes_accessed=int(n_pad * k_pad * 2
                           + k_pad * d_pad * 2 * feat_restream
                           + n_pad * 4
                           + n_pad * d_pad * 4),
    )

    if k_blocks == 1:
        grid_spec = pltpu.PrefetchScalarGridSpec(
            num_scalar_prefetch=0,
            grid=(m_blocks,),
            in_specs=[
                pl.BlockSpec((tm, k_pad), lambda i: (i, 0)),      # W counts
                pl.BlockSpec((k_pad, d_pad), lambda i: (0, 0)),   # features
                pl.BlockSpec((tm, 1), lambda i: (i, 0)),          # 1/len
            ],
            out_specs=pl.BlockSpec((tm, d_pad), lambda i: (i, 0)),
        )
        dims = ("parallel",)
        kernel = _aggregate_kernel_single
    else:
        grid_spec = pltpu.PrefetchScalarGridSpec(
            num_scalar_prefetch=0,
            grid=(m_blocks, k_blocks),
            in_specs=[
                pl.BlockSpec((tm, tk), lambda i, k: (i, k)),      # W counts
                pl.BlockSpec((tk, d_pad), lambda i, k: (k, 0)),   # features
                pl.BlockSpec((tm, 1), lambda i, k: (i, 0)),       # 1/len
            ],
            out_specs=pl.BlockSpec((tm, d_pad), lambda i, k: (i, 0)),
        )
        dims = ("parallel", "arbitrary")
        kernel = _aggregate_kernel_reduce

    out = pl.pallas_call(
        kernel,
        out_shape=jax.ShapeDtypeStruct((n_pad, d_pad), jnp.float32),
        grid_spec=grid_spec,
        compiler_params=pltpu.CompilerParams(
            dimension_semantics=dims,
            # Leave headroom inside v7x's 64 MiB physical VMEM; plenty of room
            # on v5e/v6e (128 MiB).
            vmem_limit_bytes=48 * 1024 * 1024,
        ),
        cost_estimate=cost,
    )(w, f, iv)
    return out[:n, :d]


# ---------------------------------------------------------------------------
# Host-side glue mirroring Aggregator.forward (sampling / mapping / dict
# lookups are inherently host-side Python+NumPy, exactly as in the original).
# ---------------------------------------------------------------------------
def aggregator_forward(features, nodes, mapping, rows, num_samples=25,
                       output_dim=None, rng=None):
    """features: jnp.ndarray [n_prev, input_dim]; returns [len(nodes), output_dim]."""
    if rng is None:
        rng = np.random.default_rng(0)
    _choice, _len, _min = (rng.choice, len, min)

    mapped_rows = [np.array([mapping[v] for v in row], dtype=np.int64)
                   for row in rows]
    if num_samples == -1:
        sampled_rows = mapped_rows
    else:
        sampled_rows = [
            _choice(row, _min(_len(row), num_samples), _len(row) < num_samples)
            if _len(row) != 0 else row
            for row in mapped_rows
        ]

    n = _len(nodes)
    n_prev, input_dim = features.shape
    if output_dim is None:
        output_dim = input_dim
    assert output_dim == input_dim, "only works when output_dim == input_dim"

    # Vectorized construction of the exact integer-count matrix and per-row
    # reciprocal (no per-row Python scatter loop).
    lens = np.array([_len(sr) for sr in sampled_rows], dtype=np.int64)
    counts = np.zeros((n, n_prev), dtype=np.float32)
    if int(lens.sum()) > 0:
        row_idx = np.repeat(np.arange(n, dtype=np.int64), lens)
        col_idx = np.concatenate(
            [sr for sr in sampled_rows if _len(sr) > 0]).astype(np.int64)
        np.add.at(counts, (row_idx, col_idx), 1.0)
    # Counts are exact in bf16 only up to 256 (8-bit mantissa).
    assert float(counts.max()) <= 256.0, \
        "sample counts > 256 not exactly representable in bf16"
    inv = np.where(lens > 0, 1.0 / np.maximum(lens, 1), 0.0).astype(np.float32)

    out = aggregate_pallas(counts, jnp.asarray(features), inv)
    return out, sampled_rows


# ---------------------------------------------------------------------------
# Demo / self-check
# ---------------------------------------------------------------------------
if __name__ == "__main__":
    # Small shapes: 16 previous-layer nodes, 8 current-layer nodes, 32 features.
    n_prev, n, input_dim = 16, 8, 32
    num_samples = 5

    key = jax.random.PRNGKey(0)
    features = jax.random.normal(key, (n_prev, input_dim), dtype=jnp.float32)

    # Previous layer holds nodes [0..15]; mapping is identity for simplicity.
    mapping = {v: v for v in range(n_prev)}
    nodes = np.arange(n)

    # Deterministic neighbor lists (one node intentionally has no neighbors).
    g = np.random.default_rng(42)
    rows = []
    for i in range(n):
        if i == 3:
            rows.append(np.array([], dtype=np.int64))  # isolated node -> zeros
        else:
            deg = int(g.integers(1, 8))
            rows.append(g.choice(n_prev, size=deg, replace=False).astype(np.int64))

    out, sampled_rows = aggregator_forward(
        features, nodes, mapping, rows, num_samples=num_samples,
        output_dim=input_dim, rng=np.random.default_rng(0))
    out = jax.block_until_ready(out)

    # Pure-NumPy reference of the PyTorch forward (mean _aggregate), evaluated
    # on bf16-rounded features to match the bf16 MXU path (accumulation f32).
    feats_bf = np.asarray(jnp.asarray(features, jnp.bfloat16).astype(jnp.float32))
    ref = np.zeros((n, input_dim), dtype=np.float32)
    for i in range(n):
        if len(sampled_rows[i]) != 0:
            ref[i, :] = feats_bf[sampled_rows[i], :].sum(axis=0) / len(sampled_rows[i])

    assert out.shape == (n, input_dim)
    assert np.allclose(np.asarray(out), ref, atol=1e-3, rtol=1e-3)
    print("KERNEL_OK")
</pallas_src>

<mosaic_0001>
module attributes {stable_mosaic.version = 11 : i64} {
  func.func @_aggregate_kernel_single(%arg0: i32, %arg1: memref<8x128xbf16, #tpu.memory_space<vmem>>, %arg2: memref<128x128xbf16, #tpu.memory_space<vmem>>, %arg3: memref<8x1xf32, #tpu.memory_space<vmem>>, %arg4: memref<8x128xf32, #tpu.memory_space<vmem>>) attributes {dimension_semantics = [#tpu.dimension_semantics<parallel>], iteration_bounds = array<i64: 1>, scalar_prefetch = 0 : i64, scratch_operands = 0 : i64, tpu.core_type = #tpu.core_type<tc>, window_params = [{transform_indices = @transform_0, window_bounds = array<i64: 8, 128>}, {pipeline_mode = #tpu.pipeline_mode<synchronous>, transform_indices = @transform_1, window_bounds = array<i64: 128, 128>}, {transform_indices = @transform_2, window_bounds = array<i64: 8, 1>}, {transform_indices = @transform_3, window_bounds = array<i64: 8, 128>}]} {
    %c0 = arith.constant 0 : index
    %c0_0 = arith.constant 0 : index
    %0 = vector.load %arg1[%c0, %c0_0] : memref<8x128xbf16, #tpu.memory_space<vmem>>, vector<8x128xbf16>
    %c0_1 = arith.constant 0 : index
    %c0_2 = arith.constant 0 : index
    %1 = vector.load %arg2[%c0_1, %c0_2] : memref<128x128xbf16, #tpu.memory_space<vmem>>, vector<128x128xbf16>
    %cst = arith.constant dense<0.000000e+00> : vector<8x128xf32>
    %2 = tpu.matmul %0, %1, %cst {dimension_numbers = #tpu.dot_dimension_numbers<[1], [0], [0], [1], [0, 0, 1, 1], [], []>} : vector<8x128xbf16>, vector<128x128xbf16>, vector<8x128xf32> -> vector<8x128xf32>
    %c0_3 = arith.constant 0 : index
    %c0_4 = arith.constant 0 : index
    %3 = vector.load %arg3[%c0_3, %c0_4] : memref<8x1xf32, #tpu.memory_space<vmem>>, vector<8x1xf32>
    %4 = vector.broadcast %3 : vector<8x1xf32> to vector<8x128xf32>
    %5 = arith.mulf %2, %4 : vector<8x128xf32>
    %c0_5 = arith.constant 0 : index
    %c0_6 = arith.constant 0 : index
    %6 = vector.load %arg4[%c0_5, %c0_6] : memref<8x128xf32, #tpu.memory_space<vmem>>, vector<8x128xf32>
    tpu.vector_store %arg4[%c0_5, %c0_6], %5 {strides = array<i32>} : memref<8x128xf32, #tpu.memory_space<vmem>>, vector<8x128xf32>,
    return
  }
  func.func @transform_0(%arg0: i32) -> (i32, i32) {
    %c0_i32 = arith.constant 0 : i32
    %c0_i32_0 = arith.constant 0 : i32
    return %arg0, %c0_i32 : i32, i32
  }
  func.func @transform_1(%arg0: i32) -> (i32, i32) {
    %c0_i32 = arith.constant 0 : i32
    %c0_i32_0 = arith.constant 0 : i32
    %c0_i32_1 = arith.constant 0 : i32
    return %c0_i32, %c0_i32_0 : i32, i32
  }
  func.func @transform_2(%arg0: i32) -> (i32, i32) {
    %c0_i32 = arith.constant 0 : i32
    %c0_i32_0 = arith.constant 0 : i32
    return %arg0, %c0_i32 : i32, i32
  }
  func.func @transform_3(%arg0: i32) -> (i32, i32) {
    %c0_i32 = arith.constant 0 : i32
    %c0_i32_0 = arith.constant 0 : i32
    return %arg0, %c0_i32 : i32, i32
  }
}

</mosaic_0001>

<bundles_post_ra>
// kernel: tpu_custom_call.1
= control target key start
LH: loop header
LB: loop body
LE: loop exit
PB: predicated region body
PF: predicated region fallthrough
CT: control target
= control target key end

     0   :  { %8 = vsyncpa [#allocation3], 0  ;;  %s269_s0 = inlined_call_operand.vmem [shape: bf16[8,128], index: 0, kind: input, shape index: {}]   ;;  %s270_s1 = inlined_call_operand.hbm [shape: bf16[128,128], index: 1, kind: input, shape index: {}]   ;;  %s271_s2 = inlined_call_operand.vmem [shape: f32[8,1], index: 2, kind: input, shape index: {}]   ;;  %s272_s3 = inlined_call_operand.hbm [shape: f32[8,128], index: 3, kind: output, shape index: {}]  }
   0x1   :  { %9 = vsyncpa [#allocation4], 0  ;;  %s16_s14 = sshll.u32 %s270_s1, 4  ;;  %s232_s15 = smov [#allocation2]   ;;  %s17_s14 = int_to_ptr.hbm [resolvable:$true] %s16_s14 }
   0x2   :  { %s18_s16 = sshll.u32 %s232_s15, 4  ;;  %s233_s17 = smov 64   ;;  %s19_s16 = int_to_ptr.vmem [resolvable:$true] %s18_s16 }
   0x3   :  { %s234_s18 = smov 4  }
   0x4   :  { %24 = dma.hbm_to_vmem [thread:$0]  %s17_s14, 1024, %s19_s16, [#allocation3], %s233_s17, %s233_s17, %s234_s18  }
   0x5   :  { %228 = dma.done.wait [#allocation3], 1024  }
   0x6   :  { %229 = vsyncadd [#allocation3], 4294966272  ;;  %v173_v0 = vld [vmem:[#allocation2 + $0x38] sm:$0xff]  ;;  %v172_v1 = vld [vmem:[#allocation2 + $0x30] sm:$0xff]  ;;  %v235_v2 = vmov 0   ;;  %s124_s25 = sshll.u32 %s272_s3, 4  ;;  %s125_s25 = int_to_ptr.hbm [resolvable:$true] %s124_s25 }
   0x7   :  { %96 = vmatpush.bf16.msra.mxu0 %v173_v0  ;;  %179 = vset.pattern.permute.xlu0 %v235_v2  ;;  %v109_v3 = vld [vmem:[%s271_s2] sm:$0xff]  ;;  %v171_v4 = vld [vmem:[#allocation2 + $0x28] sm:$0xff]  ;;  %v169_v6 = vld [vmem:[#allocation2 + $0x18] sm:$0xff]  ;;  %s236_s2 = smov [#allocation5]  }
   0x8   :  { %112 = vperm.xlu0 %179, %v109_v3   ;;  %v170_v5 = vld [vmem:[#allocation2 + $0x20] sm:$0xff]  ;;  %v168_v7 = vld [vmem:[#allocation2 + $0x10] sm:$0xff]  ;;  %v167_v8 = vld [vmem:[#allocation2 + $0x8] sm:$0xff]  ;;  %s122_s22 = sshll.u32 %s236_s2, 4  ;;  %s123_s22 = int_to_ptr.vmem [resolvable:$true] %s122_s22 }
   0x9   :  { %v166_v9 = vld [vmem:[#allocation2] sm:$0xff] }
   0xa   :  { %v31_v10 = vld [vmem:[%s269_s0] sm:$0xf] }
   0xb   :  { %97 = vmatpush.bf16.msra.mxu0 %v172_v1 }
   0xf   :  { %98 = vmatpush.bf16.msra.mxu0 %v171_v4 }
  0x13   :  { %99 = vmatpush.bf16.msra.mxu0 %v170_v5 }
  0x17   :  { %100 = vmatpush.bf16.msra.mxu0 %v169_v6 }
  0x1b   :  { %101 = vmatpush.bf16.msra.mxu0 %v168_v7 }
  0x1f   :  { %102 = vmatpush.bf16.msra.mxu0 %v167_v8 }
  0x23   :  { %103 = vmatpush.bf16.msra.mxu0 %v166_v9 }
  0x26   :  { %104 = vmatmul.bf16.vlgmr.msra.gmra.mxu0 %v31_v10 }
  0x7a   :  { %v113_v11 = vpop.permute.xlu0 %112 }
  0xa3   :  { %v105_v12 = vpop.f32.mrf.mxu0 }
  0xa4   :  { %v115_v13 = vmul.f32 %v113_v11, %v105_v12 }
  0xa6   :  { %116 = vst [vmem:[#allocation5] sm:$0xff] %v115_v13 }
  0xa7   :  { %127 = dma.vmem_to_hbm [thread:$0]  %s123_s22, 128, %s125_s25, [#allocation4]  }
  0xab   :  { %v107_v14 = vpop.f32.mrf.mxu0 }
  0xac   :  { %230 = dma.done.wait [#allocation4], 128  }
  0xad   :  { %231 = vsyncadd [#allocation4], 4294967168 }
  0xae   :  { %132 = vsyncpa [#allocation3], 1 }
  0xaf   :  { %133 = vsyncpa [#allocation4], 1 }

</bundles_post_ra>
